<compile_context>
chip_gen: v6e
topology: v6e:2x2x1
jax: 0.10.0
libtpu: 0.0.40
codegen_flags: <defaults>
</compile_context>

<pallas_src>
import jax
import jax.numpy as jnp
from jax.experimental import pallas as pl
from jax.experimental.pallas import tpu as pltpu

_LANE_CANDIDATES = (512, 256, 128)   # lane widths: multiples of 128 -> unmasked full-vreg loads/stores
_MAX_BLOCK_ROWS = 2048               # up to 2048 x 512 f32 = 4 MiB compute tile per grid step
_TINY = float(jnp.finfo(jnp.float32).tiny)   # smallest normal f32; 0 * log(tiny) == 0


def _round_up(a, b):
    return ((a + b - 1) // b) * b


def _sublane_multiple(dtype):
    # Sub-32-bit dtypes pack along sublanes: (8,128) f32, (16,128) bf16, (32,128) 8-bit.
    return {4: 8, 2: 16, 1: 32}.get(jnp.dtype(dtype).itemsize, 8)


def _make_entropy_kernel(block_rows, lanes, rows, num_blocks, mask_last):
    """Builds the per-block partial-sum kernel (all sizes are static Python ints)."""

    def kernel(x_ref, o_ref):
        # x_ref : (block_rows, lanes) input tile (input dtype; upcast in-register)
        # o_ref : (8, lanes) f32 partial-sum slab owned by this grid step
        x = x_ref[...].astype(jnp.float32)
        # xlogy semantics via max: 0 * log(tiny) == 0, so exact zeros contribute
        # nothing.  (PyTorch would give NaN at x==0; inputs are assumed to be
        # strictly positive probabilities.)
        y = x * jnp.log(jnp.maximum(x, _TINY))

        def _rowsum(z):
            # Sublane-aligned leading-dim split (groups of 8 rows) is a layout
            # no-op; the axis-0 sum lowers to pure VPU vreg adds (no XLU
            # cross-lane reduce in the hot loop).
            return z.reshape(block_rows // 8, 8, lanes).sum(axis=0)

        if mask_last:
            i = pl.program_id(0)

            @pl.when(i < num_blocks - 1)
            def _():
                o_ref[...] = _rowsum(y)

            @pl.when(i == num_blocks - 1)
            def _():
                # The last block sticks out past `rows`; Pallas leaves the
                # out-of-bounds rows as garbage, so zero them by row index.
                rid = jax.lax.broadcasted_iota(jnp.int32, (block_rows, lanes), 0)
                valid = (i * block_rows + rid) < rows
                o_ref[...] = _rowsum(jnp.where(valid, y, 0.0))
        else:
            o_ref[...] = _rowsum(y)

    return kernel


def entropy_loss(x):
    """x: (N, C, H, W) array of (assumed positive) probabilities.

    Returns scalar f32: -mean_{N,H,W}( sum_C x * log(x) ).
    """
    n, c, h, w = x.shape
    total = n * c * h * w
    num_terms = n * h * w                      # torch mean is over N*H*W after the channel sum
    sub = _sublane_multiple(x.dtype)

    lanes = next((l for l in _LANE_CANDIDATES if total % (sub * l) == 0), None)
    if lanes is not None:
        # Zero-copy path: contiguous reshape only, no data movement before the kernel.
        rows = total // lanes
        x2d = x.reshape(rows, lanes)
    else:
        # TODO(synk): rare ragged fallback (element count not a multiple of
        # sub*128) still materializes one padded HBM copy; a fully general
        # zero-copy path would need manual 1-D DMA tiling.
        lanes = 128
        padded = _round_up(total, sub * lanes)
        rows = padded // lanes
        x2d = jnp.pad(jnp.ravel(x), (0, padded - total)).reshape(rows, lanes)

    num_blocks = int(pl.cdiv(rows, _MAX_BLOCK_ROWS))
    block_rows = _round_up(-(-rows // num_blocks), sub)   # multiple of `sub` (>=8), <= rows
    mask_last = (num_blocks * block_rows) != rows         # static: last block partial?

    partials = pl.pallas_call(
        _make_entropy_kernel(block_rows, lanes, rows, num_blocks, mask_last),
        out_shape=jax.ShapeDtypeStruct((num_blocks * 8, lanes), jnp.float32),
        grid_spec=pltpu.PrefetchScalarGridSpec(
            num_scalar_prefetch=0,
            grid=(num_blocks,),
            in_specs=[pl.BlockSpec((block_rows, lanes), lambda i: (i, 0))],
            out_specs=pl.BlockSpec((8, lanes), lambda i: (i, 0)),
        ),
        compiler_params=pltpu.CompilerParams(
            # Each step owns its own output block -> no cross-step state, so the
            # grid axis is fully parallel (megacore / multi-TC sharding).
            # TODO(synk): on v7x consider pltpu.CORE_PARALLEL to force a genuine
            # 2-TensorCore split of the grid axis.
            dimension_semantics=("parallel",),
            # Double-buffered input (<= 8 MiB f32) + compiler temporaries fit
            # easily; the explicit limit lifts v5e's 16 MiB default scoped cap
            # for the larger block and stays under v7x's 64 MiB physical VMEM.
            vmem_limit_bytes=48 * 1024 * 1024,
        ),
    )(x2d)

    total_sum = jnp.sum(partials)              # tiny: num_blocks * 8 * lanes f32 elements
    return -total_sum / jnp.float32(num_terms)


if __name__ == "__main__":
    key = jax.random.PRNGKey(0)
    N, C, H, W = 2, 4, 16, 16
    # positive "probability-like" input (module assumes softmax already applied)
    logits = jax.random.normal(key, (N, C, H, W), dtype=jnp.float32)
    x = jax.nn.softmax(logits, axis=1)

    loss = jax.jit(entropy_loss)(x)
    loss = jax.block_until_ready(loss)

    # pure-JAX reference check
    ref = -1.0 * jnp.mean(jnp.sum(x * jnp.log(x), axis=1))
    assert jnp.allclose(loss, ref, rtol=1e-5, atol=1e-6), (loss, ref)

    print("KERNEL_OK")
</pallas_src>

<mosaic_0001>
module attributes {stable_mosaic.version = 11 : i64} {
  func.func @kernel(%arg0: i32, %arg1: memref<8x256xf32, #tpu.memory_space<vmem>>, %arg2: memref<8x256xf32, #tpu.memory_space<vmem>>) attributes {dimension_semantics = [#tpu.dimension_semantics<parallel>], iteration_bounds = array<i64: 1>, scalar_prefetch = 0 : i64, scratch_operands = 0 : i64, tpu.core_type = #tpu.core_type<tc>, window_params = [{transform_indices = @transform_0, window_bounds = array<i64: 8, 256>}, {transform_indices = @transform_1, window_bounds = array<i64: 8, 256>}]} {
    %c0 = arith.constant 0 : index
    %c0_0 = arith.constant 0 : index
    %0 = vector.load %arg1[%c0, %c0_0] : memref<8x256xf32, #tpu.memory_space<vmem>>, vector<8x256xf32>
    %cst = arith.constant 1.17549435E-38 : f32
    %1 = vector.broadcast %cst : f32 to vector<8x256xf32>
    %2 = arith.maximumf %0, %1 : vector<8x256xf32>
    %3 = math.log %2 : vector<8x256xf32>
    %4 = arith.mulf %0, %3 : vector<8x256xf32>
    %5 = vector.shape_cast %4 : vector<8x256xf32> to vector<1x8x256xf32>
    %cst_1 = arith.constant dense<0.000000e+00> : vector<8x256xf32>
    %6 = vector.multi_reduction <add>, %5, %cst_1 [0] : vector<1x8x256xf32> to vector<8x256xf32>
    %c0_2 = arith.constant 0 : index
    %c0_3 = arith.constant 0 : index
    %7 = vector.load %arg2[%c0_2, %c0_3] : memref<8x256xf32, #tpu.memory_space<vmem>>, vector<8x256xf32>
    tpu.vector_store %arg2[%c0_2, %c0_3], %6 {strides = array<i32>} : memref<8x256xf32, #tpu.memory_space<vmem>>, vector<8x256xf32>,
    return
  }
  func.func @transform_0(%arg0: i32) -> (i32, i32) {
    %c0_i32 = arith.constant 0 : i32
    %c0_i32_0 = arith.constant 0 : i32
    return %arg0, %c0_i32 : i32, i32
  }
  func.func @transform_1(%arg0: i32) -> (i32, i32) {
    %c0_i32 = arith.constant 0 : i32
    %c0_i32_0 = arith.constant 0 : i32
    return %arg0, %c0_i32 : i32, i32
  }
}

</mosaic_0001>

<bundles_post_ra>
// kernel: entropy_loss.1
= control target key start
LH: loop header
LB: loop body
LE: loop exit
PB: predicated region body
PF: predicated region fallthrough
CT: control target
= control target key end

     0   :  { %s52_s0 = inlined_call_operand.vmem [shape: f32[8,256], index: 0, kind: input, shape index: {}]   ;;  %s53_s1 = inlined_call_operand.vmem [shape: f32[8,256], index: 1, kind: output, shape index: {}]  }
   0x1   :  { %v8_v0 = vld [vmem:[%s52_s0] sm:$0xff]  ;;  %v9_v1 = vld [vmem:[%s52_s0 + $0x8] sm:$0xff] }
   0x2   :  { %v10_v2 = vmax.f32 %v8_v0, 1.1754944e-38  ;;  %v11_v3 = vmax.f32 %v9_v1, 1.1754944e-38 }
   0x4   :  { %26 = vlog2.f32 %v10_v2 }
   0x5   :  { %28 = vlog2.f32 %v11_v3 }
  0x11   :  { %v27_v4 = vpop.eup %26 }
  0x12   :  { %v29_v5 = vpop.eup %28  ;;  %v13_v6 = vmul.f32 0.6931472, %v27_v4 }
  0x13   :  { %v15_v7 = vmul.f32 0.6931472, %v29_v5 }
  0x14   :  { %v16_v8 = vmul.f32 %v13_v6, %v8_v0 }
  0x15   :  { %v17_v9 = vmul.f32 %v15_v7, %v9_v1 }
  0x16   :  { %20 = vst [vmem:[%s53_s1] sm:$0xff] %v16_v8 }
  0x17   :  { %21 = vst [vmem:[%s53_s1 + $0x8] sm:$0xff] %v17_v9 }

</bundles_post_ra>
